<compile_context>
chip_gen: v6e
topology: v6e:2x2x1
jax: 0.10.0
libtpu: 0.0.40
codegen_flags: <defaults>
</compile_context>

<pallas_src>
import functools

import jax
import jax.numpy as jnp
from jax.experimental import pallas as pl
from jax.experimental.pallas import tpu as pltpu

LANE = 128  # hidden dims padded to lane width (weights are resident, one-time cost)


def _round_up(n: int, m: int) -> int:
    return ((n + m - 1) // m) * m


def _cdiv(a: int, b: int) -> int:
    return -(-a // b)


def tiny_nn_kernel(x_ref, w1_ref, b1_ref, w2_ref, b2_ref, w3_ref, b3_ref, o_ref):
    """One batch tile: 3 MXU matmuls + f32 bias/LeakyReLU(0.1) on the VPU."""

    def leaky_relu(v):
        return jnp.where(v > 0, v, 0.1 * v)

    # Layer 1: (tb, in_dim) @ (in_dim, h1_p) -> f32 accumulate
    h = jnp.dot(x_ref[...], w1_ref[...], preferred_element_type=jnp.float32)
    h = leaky_relu(h + b1_ref[...])
    # Layer 2 (cast back to weight dtype so bf16 inputs keep the bf16 MXU path)
    h = jnp.dot(h.astype(w2_ref.dtype), w2_ref[...],
                preferred_element_type=jnp.float32)
    h = leaky_relu(h + b2_ref[...])
    # Layer 3 (no activation); output written lane-unpadded at out_dim.
    out = jnp.dot(h.astype(w3_ref.dtype), w3_ref[...],
                  preferred_element_type=jnp.float32)
    o_ref[...] = (out + b3_ref[...]).astype(o_ref.dtype)


def prepare_params(params, compute_dtype=jnp.float32):
    """One-time padding / cast of weights & biases (hoisted out of the forward).

    - w1: K rows stay = in_dim (x is streamed unpadded); N cols padded to 128.
    - w2: both dims padded to 128 (matches padded layer-1 activation).
    - w3: K rows padded to 128; N cols stay = out_dim (output written unpadded).
    - Biases stay f32 (VPU epilogue is f32 on all generations).
    """
    w1, b1, w2, b2, w3, b3 = (params[k] for k in ("w1", "b1", "w2", "b2", "w3", "b3"))
    in_dim, h1 = w1.shape
    h2 = w2.shape[1]
    out_dim = w3.shape[1]
    h1_p = _round_up(h1, LANE)
    h2_p = _round_up(h2, LANE)

    def pad2(a, rows, cols, dtype):
        return jnp.pad(a, ((0, rows - a.shape[0]), (0, cols - a.shape[1]))).astype(dtype)

    return {
        "w1": pad2(w1, in_dim, h1_p, compute_dtype),
        "b1": pad2(b1, 1, h1_p, jnp.float32),
        "w2": pad2(w2, h1_p, h2_p, compute_dtype),
        "b2": pad2(b2, 1, h2_p, jnp.float32),
        "w3": pad2(w3, h2_p, out_dim, compute_dtype),
        "b3": b3.astype(jnp.float32),
    }


@functools.partial(jax.jit, static_argnames=("block_b", "compute_dtype"))
def tiny_nn_forward(x, prep, *, block_b=2048, compute_dtype=jnp.float32):
    """x: (B, input_dim) f32. prep: output of prepare_params().

    Returns (B, output_dim) f32, identical to the PyTorch tiny_NN forward
    (bit-exact in the f32 path).
    """
    w1, b1, w2, b2, w3, b3 = (prep[k] for k in ("w1", "b1", "w2", "b2", "w3", "b3"))
    B, in_dim = x.shape
    out_dim = w3.shape[1]

    # Batch tiling: keep padding waste small (don't round B up to a multiple of
    # a large tb); granule 16 for bf16 sublane packing, else 8.
    granule = 16 if compute_dtype == jnp.bfloat16 else 8
    b_g = _round_up(B, granule)
    n_steps = max(1, _cdiv(b_g, block_b))
    # v7x has 2 TensorCores; give the "parallel" batch axis >= 2 steps for
    # large batches so both cores participate.
    if n_steps == 1 and b_g > 1024:
        n_steps = 2
    tb = _round_up(_cdiv(b_g, n_steps), granule)
    b_p = tb * n_steps

    x_p = x.astype(compute_dtype)
    if b_p != B:
        x_p = jnp.pad(x_p, ((0, b_p - B), (0, 0)))

    def batch_spec(dim):          # pipelined per-grid-step tile
        return pl.BlockSpec((tb, dim), lambda i: (i, 0))

    def resident_spec(a):         # constant index_map -> stays VMEM-resident
        return pl.BlockSpec(a.shape, lambda i: (0, 0))

    out_padded = pl.pallas_call(
        tiny_nn_kernel,
        out_shape=jax.ShapeDtypeStruct((b_p, out_dim), jnp.float32),
        grid=(n_steps,),
        in_specs=[
            batch_spec(in_dim),                       # x streamed unpadded in features
            resident_spec(w1), resident_spec(b1),
            resident_spec(w2), resident_spec(b2),
            resident_spec(w3), resident_spec(b3),
        ],
        out_specs=batch_spec(out_dim),                # output written unpadded in lanes
        compiler_params=pltpu.CompilerParams(
            dimension_semantics=("parallel",),
        ),
    )(x_p, w1, b1, w2, b2, w3, b3)

    # Only the padded batch rows (LeakyReLU(bias) garbage) are dropped.
    return out_padded[:B]


def init_params(key, input_dim, hidden1, hidden2, output_dim):
    ks = jax.random.split(key, 6)

    def lin(kw, kb, fan_in, fan_out):
        bound = 1.0 / jnp.sqrt(fan_in)
        w = jax.random.uniform(kw, (fan_in, fan_out), jnp.float32, -bound, bound)
        b = jax.random.uniform(kb, (1, fan_out), jnp.float32, -bound, bound)
        return w, b

    w1, b1 = lin(ks[0], ks[1], input_dim, hidden1)
    w2, b2 = lin(ks[2], ks[3], hidden1, hidden2)
    w3, b3 = lin(ks[4], ks[5], hidden2, output_dim)
    return {"w1": w1, "b1": b1, "w2": w2, "b2": b2, "w3": w3, "b3": b3}


def reference_forward(x, p):
    def lrelu(v):
        return jnp.where(v > 0, v, 0.1 * v)

    h = lrelu(x @ p["w1"] + p["b1"])
    h = lrelu(h @ p["w2"] + p["b2"])
    return h @ p["w3"] + p["b3"]


if __name__ == "__main__":
    # config: input_dim=16, hidden1=32, hidden2=32, output_dim=8
    key = jax.random.PRNGKey(0)
    kx, kx2, kx3, kp = jax.random.split(key, 4)
    B, input_dim, hidden1, hidden2, output_dim = 8, 16, 32, 32, 8

    params = init_params(kp, input_dim, hidden1, hidden2, output_dim)
    prep_f32 = prepare_params(params, jnp.float32)

    # Small single-tile case (grid=(1,)), exact f32 path.
    x = jax.random.normal(kx, (B, input_dim), jnp.float32)
    out = jax.block_until_ready(tiny_nn_forward(x, prep_f32))
    ref = reference_forward(x, params)
    assert out.shape == (B, output_dim)
    assert jnp.allclose(out, ref, atol=1e-5, rtol=1e-5)

    # Non-multiple batch exercising the pipelined multi-step grid (grid=(3,))
    # with VMEM-resident weights and unpadded x / out streams.
    B2 = 300
    x2 = jax.random.normal(kx2, (B2, input_dim), jnp.float32)
    out2 = jax.block_until_ready(tiny_nn_forward(x2, prep_f32, block_b=128))
    ref2 = reference_forward(x2, params)
    assert out2.shape == (B2, output_dim)
    assert jnp.allclose(out2, ref2, atol=1e-5, rtol=1e-5)

    # bf16 x/weights path (HBM-byte halving + native bf16 MXU on v6e/v7x);
    # bias/LeakyReLU epilogue stays f32. Looser tolerance vs the f32 reference.
    B3 = 64
    x3 = jax.random.normal(kx3, (B3, input_dim), jnp.float32)
    prep_bf16 = prepare_params(params, jnp.bfloat16)
    out3 = jax.block_until_ready(
        tiny_nn_forward(x3, prep_bf16, compute_dtype=jnp.bfloat16))
    ref3 = reference_forward(x3, params)
    assert out3.shape == (B3, output_dim)
    assert bool(jnp.isfinite(out3).all())
    assert float(jnp.max(jnp.abs(out3 - ref3))) < 0.1

    print("KERNEL_OK")
</pallas_src>

<mosaic_0001>
module attributes {stable_mosaic.version = 11 : i64} {
  func.func @tiny_nn_kernel(%arg0: i32, %arg1: memref<8x16xf32, #tpu.memory_space<vmem>>, %arg2: memref<16x128xf32, #tpu.memory_space<vmem>>, %arg3: memref<1x128xf32, #tpu.memory_space<vmem>>, %arg4: memref<128x128xf32, #tpu.memory_space<vmem>>, %arg5: memref<1x128xf32, #tpu.memory_space<vmem>>, %arg6: memref<128x8xf32, #tpu.memory_space<vmem>>, %arg7: memref<1x8xf32, #tpu.memory_space<vmem>>, %arg8: memref<8x8xf32, #tpu.memory_space<vmem>>) attributes {dimension_semantics = [#tpu.dimension_semantics<parallel>], iteration_bounds = array<i64: 1>, scalar_prefetch = 0 : i64, scratch_operands = 0 : i64, tpu.core_type = #tpu.core_type<tc>, window_params = [{transform_indices = @transform_0, window_bounds = array<i64: 8, 16>}, {pipeline_mode = #tpu.pipeline_mode<synchronous>, transform_indices = @transform_1, window_bounds = array<i64: 16, 128>}, {pipeline_mode = #tpu.pipeline_mode<synchronous>, transform_indices = @transform_2, window_bounds = array<i64: 1, 128>}, {pipeline_mode = #tpu.pipeline_mode<synchronous>, transform_indices = @transform_3, window_bounds = array<i64: 128, 128>}, {pipeline_mode = #tpu.pipeline_mode<synchronous>, transform_indices = @transform_4, window_bounds = array<i64: 1, 128>}, {pipeline_mode = #tpu.pipeline_mode<synchronous>, transform_indices = @transform_5, window_bounds = array<i64: 128, 8>}, {pipeline_mode = #tpu.pipeline_mode<synchronous>, transform_indices = @transform_6, window_bounds = array<i64: 1, 8>}, {transform_indices = @transform_7, window_bounds = array<i64: 8, 8>}]} {
    %c0 = arith.constant 0 : index
    %c0_0 = arith.constant 0 : index
    %0 = vector.load %arg1[%c0, %c0_0] : memref<8x16xf32, #tpu.memory_space<vmem>>, vector<8x16xf32>
    %c0_1 = arith.constant 0 : index
    %c0_2 = arith.constant 0 : index
    %1 = vector.load %arg2[%c0_1, %c0_2] : memref<16x128xf32, #tpu.memory_space<vmem>>, vector<16x128xf32>
    %cst = arith.constant dense<0.000000e+00> : vector<8x128xf32>
    %2 = tpu.matmul %0, %1, %cst {dimension_numbers = #tpu.dot_dimension_numbers<[1], [0], [0], [1], [0, 0, 1, 1], [], []>} : vector<8x16xf32>, vector<16x128xf32>, vector<8x128xf32> -> vector<8x128xf32>
    %c0_3 = arith.constant 0 : index
    %c0_4 = arith.constant 0 : index
    %3 = vector.load %arg3[%c0_3, %c0_4] : memref<1x128xf32, #tpu.memory_space<vmem>>, vector<1x128xf32>
    %4 = vector.broadcast %3 : vector<1x128xf32> to vector<8x128xf32>
    %5 = arith.addf %2, %4 : vector<8x128xf32>
    %cst_5 = arith.constant 0.000000e+00 : f32
    %6 = vector.broadcast %cst_5 : f32 to vector<8x128xf32>
    %7 = arith.cmpf ogt, %5, %6 : vector<8x128xf32>
    %cst_6 = arith.constant 1.000000e-01 : f32
    %8 = vector.broadcast %cst_6 : f32 to vector<8x128xf32>
    %9 = arith.mulf %8, %5 : vector<8x128xf32>
    %10 = arith.select %7, %5, %9 : vector<8x128xi1>, vector<8x128xf32>
    %c0_7 = arith.constant 0 : index
    %c0_8 = arith.constant 0 : index
    %11 = vector.load %arg4[%c0_7, %c0_8] : memref<128x128xf32, #tpu.memory_space<vmem>>, vector<128x128xf32>
    %cst_9 = arith.constant dense<0.000000e+00> : vector<8x128xf32>
    %12 = tpu.matmul %10, %11, %cst_9 {dimension_numbers = #tpu.dot_dimension_numbers<[1], [0], [0], [1], [0, 0, 1, 1], [], []>} : vector<8x128xf32>, vector<128x128xf32>, vector<8x128xf32> -> vector<8x128xf32>
    %c0_10 = arith.constant 0 : index
    %c0_11 = arith.constant 0 : index
    %13 = vector.load %arg5[%c0_10, %c0_11] : memref<1x128xf32, #tpu.memory_space<vmem>>, vector<1x128xf32>
    %14 = vector.broadcast %13 : vector<1x128xf32> to vector<8x128xf32>
    %15 = arith.addf %12, %14 : vector<8x128xf32>
    %cst_12 = arith.constant 0.000000e+00 : f32
    %16 = vector.broadcast %cst_12 : f32 to vector<8x128xf32>
    %17 = arith.cmpf ogt, %15, %16 : vector<8x128xf32>
    %cst_13 = arith.constant 1.000000e-01 : f32
    %18 = vector.broadcast %cst_13 : f32 to vector<8x128xf32>
    %19 = arith.mulf %18, %15 : vector<8x128xf32>
    %20 = arith.select %17, %15, %19 : vector<8x128xi1>, vector<8x128xf32>
    %c0_14 = arith.constant 0 : index
    %c0_15 = arith.constant 0 : index
    %21 = vector.load %arg6[%c0_14, %c0_15] : memref<128x8xf32, #tpu.memory_space<vmem>>, vector<128x8xf32>
    %cst_16 = arith.constant dense<0.000000e+00> : vector<8x8xf32>
    %22 = tpu.matmul %20, %21, %cst_16 {dimension_numbers = #tpu.dot_dimension_numbers<[1], [0], [0], [1], [0, 0, 1, 1], [], []>} : vector<8x128xf32>, vector<128x8xf32>, vector<8x8xf32> -> vector<8x8xf32>
    %c0_17 = arith.constant 0 : index
    %c0_18 = arith.constant 0 : index
    %23 = vector.load %arg7[%c0_17, %c0_18] : memref<1x8xf32, #tpu.memory_space<vmem>>, vector<1x8xf32>
    %24 = vector.broadcast %23 : vector<1x8xf32> to vector<8x8xf32>
    %25 = arith.addf %22, %24 : vector<8x8xf32>
    %c0_19 = arith.constant 0 : index
    %c0_20 = arith.constant 0 : index
    %26 = vector.load %arg8[%c0_19, %c0_20] : memref<8x8xf32, #tpu.memory_space<vmem>>, vector<8x8xf32>
    tpu.vector_store %arg8[%c0_19, %c0_20], %25 {strides = array<i32>} : memref<8x8xf32, #tpu.memory_space<vmem>>, vector<8x8xf32>,
    return
  }
  func.func @transform_0(%arg0: i32) -> (i32, i32) {
    %c0_i32 = arith.constant 0 : i32
    %c0_i32_0 = arith.constant 0 : i32
    return %arg0, %c0_i32 : i32, i32
  }
  func.func @transform_1(%arg0: i32) -> (i32, i32) {
    %c0_i32 = arith.constant 0 : i32
    %c0_i32_0 = arith.constant 0 : i32
    %c0_i32_1 = arith.constant 0 : i32
    return %c0_i32, %c0_i32_0 : i32, i32
  }
  func.func @transform_2(%arg0: i32) -> (i32, i32) {
    %c0_i32 = arith.constant 0 : i32
    %c0_i32_0 = arith.constant 0 : i32
    %c0_i32_1 = arith.constant 0 : i32
    return %c0_i32, %c0_i32_0 : i32, i32
  }
  func.func @transform_3(%arg0: i32) -> (i32, i32) {
    %c0_i32 = arith.constant 0 : i32
    %c0_i32_0 = arith.constant 0 : i32
    %c0_i32_1 = arith.constant 0 : i32
    return %c0_i32, %c0_i32_0 : i32, i32
  }
  func.func @transform_4(%arg0: i32) -> (i32, i32) {
    %c0_i32 = arith.constant 0 : i32
    %c0_i32_0 = arith.constant 0 : i32
    %c0_i32_1 = arith.constant 0 : i32
    return %c0_i32, %c0_i32_0 : i32, i32
  }
  func.func @transform_5(%arg0: i32) -> (i32, i32) {
    %c0_i32 = arith.constant 0 : i32
    %c0_i32_0 = arith.constant 0 : i32
    %c0_i32_1 = arith.constant 0 : i32
    return %c0_i32, %c0_i32_0 : i32, i32
  }
  func.func @transform_6(%arg0: i32) -> (i32, i32) {
    %c0_i32 = arith.constant 0 : i32
    %c0_i32_0 = arith.constant 0 : i32
    %c0_i32_1 = arith.constant 0 : i32
    return %c0_i32, %c0_i32_0 : i32, i32
  }
  func.func @transform_7(%arg0: i32) -> (i32, i32) {
    %c0_i32 = arith.constant 0 : i32
    %c0_i32_0 = arith.constant 0 : i32
    return %arg0, %c0_i32 : i32, i32
  }
}

</mosaic_0001>

<bundles_post_ra>
// kernel: tiny_nn_forward.1
= control target key start
LH: loop header
LB: loop body
LE: loop exit
PB: predicated region body
PF: predicated region fallthrough
CT: control target
= control target key end

     0   :  { %12 = vsyncpa [#allocation3], 0  ;;  %s769_s0 = inlined_call_operand.hbm [shape: f32[8,16], index: 0, kind: input, shape index: {}]   ;;  %s770_s1 = inlined_call_operand.vmem [shape: f32[16,128], index: 1, kind: input, shape index: {}]   ;;  %s771_s2 = inlined_call_operand.vmem [shape: f32[1,128], index: 2, kind: input, shape index: {}]   ;;  %s772_s3 = inlined_call_operand.vmem [shape: f32[128,128], index: 3, kind: input, shape index: {}]   ;;  %s773_s4 = inlined_call_operand.hbm [shape: f32[1,128], index: 4, kind: input, shape index: {}]   ;;  %s774_s5 = inlined_call_operand.vmem [shape: f32[128,8], index: 5, kind: input, shape index: {}]   ;;  %s775_s6 = inlined_call_operand.hbm [shape: f32[1,8], index: 6, kind: input, shape index: {}]   ;;  %s776_s7 = inlined_call_operand.hbm [shape: f32[8,8], index: 7, kind: output, shape index: {}]  }
   0x1   :  { %13 = vsyncpa [#allocation6], 0 }
   0x2   :  { %14 = vsyncpa [#allocation4], 0  ;;  %s566_s24 = smov [#allocation5]   ;;  %s567_s26 = smov [#allocation2]  }
   0x3   :  { %s37_s25 = sshll.u32 %s566_s24, 4  ;;  %s21_s27 = sshll.u32 %s567_s26, 4  ;;  %s38_s25 = int_to_ptr.vmem [resolvable:$true] %s37_s25  ;;  %s22_s27 = int_to_ptr.vmem [resolvable:$true] %s21_s27 }
   0x4   :  { %s488_s28 = scalar_lea.vmem %s38_s25, 16  ;;  %s492_s29 = scalar_lea.vmem %s38_s25, 32 }
   0x5   :  { %p489_p0 = scmp.ne.s32.totalorder %s38_s25, %s488_s28  ;;  %p493_p1 = scmp.lt.s32.totalorder %s38_s25, %s38_s25 }
   0x6   :  { %p494_p2 = scmp.lt.s32.totalorder %s492_s29, %s488_s28 }
   0x8   :  { %p495_p3 = por %p494_p2, %p493_p1 }
   0xa   :  { %p496_p4 = pnand %p495_p3, %p489_p0 }
   0xc   :  { %499 = shalt.err (!%p496_p4)
}
   0xd   :  { %40 = dma.hbm_to_vmem [thread:$0]  %s773_s4, 16, %s38_s25, [#allocation6]  }
   0xe   :  { %s508_s9 = scalar_lea.vmem %s22_s27, 128  ;;  %p513_p6 = scmp.lt.s32.totalorder %s22_s27, %s22_s27 }
   0xf   :  { %p509_p5 = scmp.ne.s32.totalorder %s22_s27, %s508_s9  ;;  %p514_p7 = scmp.lt.s32.totalorder %s508_s9, %s508_s9 }
  0x11   :  { %p515_p8 = por %p514_p7, %p513_p6 }
  0x13   :  { %p516_p9 = pnand %p515_p8, %p509_p5 }
  0x15   :  { %519 = shalt.err (!%p516_p9)
}
  0x16   :  { %24 = dma.hbm_to_vmem [thread:$0]  %s769_s0, 128, %s22_s27, [#allocation3]  }
  0x17   :  { %s568_s12 = smov [#allocation7]  }
  0x18   :  { %s49_s13 = sshll.u32 %s568_s12, 4  ;;  %s50_s13 = int_to_ptr.vmem [resolvable:$true] %s49_s13 }
  0x19   :  { %s528_s14 = scalar_lea.vmem %s50_s13, 16  ;;  %s532_s15 = scalar_lea.vmem %s50_s13, 32 }
  0x1a   :  { %p529_p10 = scmp.ne.s32.totalorder %s50_s13, %s528_s14  ;;  %p533_p11 = scmp.lt.s32.totalorder %s50_s13, %s50_s13 }
  0x1b   :  { %p534_p12 = scmp.lt.s32.totalorder %s532_s15, %s528_s14 }
  0x1d   :  { %p535_p13 = por %p534_p12, %p533_p11 }
  0x1f   :  { %p536_p0 = pnand %p535_p13, %p529_p10 }
  0x21   :  { %539 = shalt.err (!%p536_p0)
}
  0x22   :  { %52 = dma.hbm_to_vmem [thread:$0]  %s775_s6, 16, %s50_s13, [#allocation6]  }
  0x23   :  { %560 = dma.done.wait [#allocation3], 128  }
  0x24   :  { %561 = vsyncadd [#allocation3], 4294967168 }
  0x25   :  { %562 = dma.done.wait [#allocation6], 32  }
  0x26   :  { %563 = vsyncadd [#allocation6], 4294967264  ;;  %v569_v0 = vmov 0.0   ;;  %vm570_vm0 = vmmov 0   ;;  %v64_v1 = vld [vmem:[%s770_s1 + $0x8] sm:$0xff]  ;;  %v63_v2 = vld [vmem:[%s770_s1] sm:$0xff] }
  0x27   :  { %397 = vmatprep.subr.mxu0 %v569_v0  ;;  %401 = vmatprep.mubr.msk.f32.mxu0 %vm570_vm0, %v569_v0  ;;  %v62_v3 = vld [vmem:[#allocation2] sm:$0xff]  ;;  %vm72_vm1 = vcmask 130048   ;;  %v164_v4 = vld [vmem:[%s772_s3 + $0x78] sm:$0xff]  ;;  %v163_v5 = vld [vmem:[%s772_s3 + $0x70] sm:$0xff]  ;;  %s571_s28 = smov [#allocation8]   ;;  %vm338_vm4 = vcmask 64512  }
  0x28   :  { %404 = vmatprep.subr.mxu1 %v569_v0  ;;  %436 = vmatprep.mubr.msk.f32.mxu1 %vm570_vm0, %v569_v0  ;;  %v162_v6 = vld [vmem:[%s772_s3 + $0x68] sm:$0xff]  ;;  %v161_v7 = vld [vmem:[%s772_s3 + $0x60] sm:$0xff]  ;;  %v160_v8 = vld [vmem:[%s772_s3 + $0x58] sm:$0xff] }
  0x29   :  { %398 = vmatpush3.msra.mxu0 %v64_v1  ;;  %405 = vmatpush3.msra.mxu1 %v164_v4  ;;  %v159_v9 = vld [vmem:[%s772_s3 + $0x50] sm:$0xff]  ;;  %v158_v10 = vld [vmem:[%s772_s3 + $0x48] sm:$0xff]  ;;  %v157_v11 = vld [vmem:[%s772_s3 + $0x40] sm:$0xff] }
  0x2a   :  { %399 = vmatprep.subr.mxu0 %v569_v0  ;;  %406 = vmatprep.subr.mxu1 %v569_v0  ;;  %v156_v12 = vld [vmem:[%s772_s3 + $0x38] sm:$0xff]  ;;  %v155_v13 = vld [vmem:[%s772_s3 + $0x30] sm:$0xff]  ;;  %v154_v14 = vld [vmem:[%s772_s3 + $0x28] sm:$0xff] }
  0x2b   :  { %400 = vmatpush3.msra.mxu0 %v63_v2  ;;  %407 = vmatpush3.msra.mxu1 %v163_v5  ;;  %v153_v15 = vld [vmem:[%s772_s3 + $0x20] sm:$0xff]  ;;  %v152_v16 = vld [vmem:[%s772_s3 + $0x18] sm:$0xff]  ;;  %v151_v17 = vld [vmem:[%s772_s3 + $0x10] sm:$0xff] }
  0x2c   :  { %402 = vmatmul.mubr.msk.f32.vlgmr.msra.gmra.mxu0 %vm72_vm1, %v62_v3  ;;  %408 = vmatprep.subr.mxu1 %v569_v0  ;;  %v150_v18 = vld [vmem:[%s772_s3 + $0x8] sm:$0xff]  ;;  %v149_v19 = vld [vmem:[%s772_s3] sm:$0xff]  ;;  %v260_v20 = vld [vmem:[%s774_s5 + $0x78] sm:$0xff]  ;;  %s346_s3 = sshll.u32 %s571_s28, 4  ;;  %s347_s3 = int_to_ptr.vmem [resolvable:$true] %s346_s3 }
  0x2d   :  { %439 = vmatprep.subr.mxu0 %v569_v0  ;;  %409 = vmatpush3.msra.mxu1 %v162_v6  ;;  %v259_v21 = vld [vmem:[%s774_s5 + $0x70] sm:$0xff]  ;;  %v258_v22 = vld [vmem:[%s774_s5 + $0x68] sm:$0xff]  ;;  %v257_v23 = vld [vmem:[%s774_s5 + $0x60] sm:$0xff]  ;;  %p545_p2 = scmp.lt.s32.totalorder %s347_s3, %s347_s3 }
  0x2e   :  { %471 = vmatprep.mubr.msk.f32.mxu0 %vm570_vm0, %v569_v0  ;;  %410 = vmatprep.subr.mxu1 %v569_v0  ;;  %v256_v24 = vld [vmem:[%s774_s5 + $0x58] sm:$0xff]  ;;  %v255_v25 = vld [vmem:[%s774_s5 + $0x50] sm:$0xff]  ;;  %v254_v26 = vld [vmem:[%s774_s5 + $0x48] sm:$0xff] }
  0x2f   :  { %411 = vmatpush3.msra.mxu1 %v161_v7  ;;  %440 = vmatpush3.msra.mxu0 %v260_v20  ;;  %v253_v27 = vld [vmem:[%s774_s5 + $0x40] sm:$0xff]  ;;  %v252_v28 = vld [vmem:[%s774_s5 + $0x38] sm:$0xff]  ;;  %v251_v29 = vld [vmem:[%s774_s5 + $0x30] sm:$0xff] }
  0x30   :  { %412 = vmatprep.subr.mxu1 %v569_v0  ;;  %441 = vmatprep.subr.mxu0 %v569_v0  ;;  %v250_v30 = vld [vmem:[%s774_s5 + $0x28] sm:$0xff]  ;;  %v249_v31 = vld [vmem:[%s774_s5 + $0x20] sm:$0xff]  ;;  %v248_v32 = vld [vmem:[%s774_s5 + $0x18] sm:$0xff] }
  0x31   :  { %413 = vmatpush3.msra.mxu1 %v160_v8  ;;  %442 = vmatpush3.msra.mxu0 %v259_v21  ;;  %v356_v33 = vld [vmem:[%s771_s2] ss:$0 sm:$0xff]  ;;  %v247_v39 = vld [vmem:[%s774_s5 + $0x10] sm:$0xff]  ;;  %v246_v40 = vld [vmem:[%s774_s5 + $0x8] sm:$0xff] }
  0x32   :  { %414 = vmatprep.subr.mxu1 %v569_v0  ;;  %443 = vmatprep.subr.mxu0 %v569_v0  ;;  %v245_v41 = vld [vmem:[%s774_s5] sm:$0xff]  ;;  %v358_v42 = vld [vmem:[#allocation5] ss:$0 sm:$0xff]  ;;  %v359_v48 = vld [vmem:[#allocation7] ss:$0 sm:$0xff]  ;;  %s540_s5 = scalar_lea.vmem %s347_s3, 128 }
  0x33   :  { %415 = vmatpush3.msra.mxu1 %v159_v9  ;;  %444 = vmatpush3.msra.mxu0 %v258_v22  ;;  %p541_p1 = scmp.ne.s32.totalorder %s347_s3, %s540_s5  ;;  %p546_p3 = scmp.lt.s32.totalorder %s540_s5, %s540_s5 }
  0x34   :  { %416 = vmatprep.subr.mxu1 %v569_v0  ;;  %445 = vmatprep.subr.mxu0 %v569_v0 }
  0x35   :  { %417 = vmatpush3.msra.mxu1 %v158_v10  ;;  %446 = vmatpush3.msra.mxu0 %v257_v23  ;;  %p547_p4 = por %p546_p3, %p545_p2 }
  0x36   :  { %418 = vmatprep.subr.mxu1 %v569_v0  ;;  %447 = vmatprep.subr.mxu0 %v569_v0 }
  0x37   :  { %419 = vmatpush3.msra.mxu1 %v157_v11  ;;  %448 = vmatpush3.msra.mxu0 %v256_v24  ;;  %p548_p5 = pnand %p547_p4, %p541_p1 }
  0x38   :  { %420 = vmatprep.subr.mxu1 %v569_v0  ;;  %449 = vmatprep.subr.mxu0 %v569_v0 }
  0x39   :  { %421 = vmatpush3.msra.mxu1 %v156_v12  ;;  %450 = vmatpush3.msra.mxu0 %v255_v25 }
  0x3a   :  { %422 = vmatprep.subr.mxu1 %v569_v0  ;;  %451 = vmatprep.subr.mxu0 %v569_v0 }
  0x3b   :  { %423 = vmatpush3.msra.mxu1 %v155_v13  ;;  %452 = vmatpush3.msra.mxu0 %v254_v26 }
  0x3c   :  { %424 = vmatprep.subr.mxu1 %v569_v0  ;;  %453 = vmatprep.subr.mxu0 %v569_v0 }
  0x3d   :  { %425 = vmatpush3.msra.mxu1 %v154_v14  ;;  %454 = vmatpush3.msra.mxu0 %v253_v27 }
  0x3e   :  { %426 = vmatprep.subr.mxu1 %v569_v0  ;;  %455 = vmatprep.subr.mxu0 %v569_v0 }
  0x3f   :  { %427 = vmatpush3.msra.mxu1 %v153_v15  ;;  %456 = vmatpush3.msra.mxu0 %v252_v28 }
  0x40   :  { %428 = vmatprep.subr.mxu1 %v569_v0  ;;  %457 = vmatprep.subr.mxu0 %v569_v0 }
  0x41   :  { %429 = vmatpush3.msra.mxu1 %v152_v16  ;;  %458 = vmatpush3.msra.mxu0 %v251_v29 }
  0x42   :  { %430 = vmatprep.subr.mxu1 %v569_v0  ;;  %459 = vmatprep.subr.mxu0 %v569_v0 }
  0x43   :  { %431 = vmatpush3.msra.mxu1 %v151_v17  ;;  %460 = vmatpush3.msra.mxu0 %v250_v30 }
  0x44   :  { %432 = vmatprep.subr.mxu1 %v569_v0  ;;  %461 = vmatprep.subr.mxu0 %v569_v0 }
  0x45   :  { %433 = vmatpush3.msra.mxu1 %v150_v18  ;;  %462 = vmatpush3.msra.mxu0 %v249_v31 }
  0x46   :  { %434 = vmatprep.subr.mxu1 %v569_v0  ;;  %463 = vmatprep.subr.mxu0 %v569_v0 }
  0x47   :  { %435 = vmatpush3.msra.mxu1 %v149_v19  ;;  %464 = vmatpush3.msra.mxu0 %v248_v32 }
  0x48   :  { %465 = vmatprep.subr.mxu0 %v569_v0 }
  0x49   :  { %466 = vmatpush3.msra.mxu0 %v247_v39 }
  0x4a   :  { %467 = vmatprep.subr.mxu0 %v569_v0 }
  0x4b   :  { %468 = vmatpush3.msra.mxu0 %v246_v40 }
  0x4c   :  { %469 = vmatprep.subr.mxu0 %v569_v0 }
  0x4d   :  { %470 = vmatpush3.msra.mxu0 %v245_v41 }
  0xec   :  { %v142_v34 = vpop.f32.mrf.mxu0 }
  0xed   :  { %v143_v35 = vadd.f32 %v356_v33, %v142_v34 }
  0xee   :  { %v403_v36 = vpop.f32.mrf.mxu0 }
  0xef   :  { %v147_v37 = vmul.f32 0.1, %v143_v35  ;;  %vm146_vm2 = vcmp.gt.f32.partialorder %v143_v35, 0.0 }
  0xf1   :  { %v148_v38 = vsel %vm146_vm2, %v143_v35, %v147_v37 }
  0xf2   :  { %437 = vmatmul.mubr.f32.vlgmr.msra.gmra.mxu1 %v148_v38 }
 0x1b2   :  { %v238_v43 = vpop.f32.mrf.mxu1 }
 0x1b3   :  { %v239_v44 = vadd.f32 %v358_v42, %v238_v43 }
 0x1b4   :  { %v438_v45 = vpop.f32.mrf.mxu1 }
 0x1b5   :  { %vm242_vm3 = vcmp.gt.f32.partialorder %v239_v44, 0.0  ;;  %v243_v46 = vmul.f32 0.1, %v239_v44 }
 0x1b7   :  { %v244_v47 = vsel %vm242_vm3, %v239_v44, %v243_v46 }
 0x1b8   :  { %472 = vmatmul.mubr.f32.vlgmr.msra.gmra.mxu0 %v244_v47 }
 0x278   :  { %v334_v49 = vpop.f32.mrf.mxu0 }
 0x279   :  { %v335_v50 = vadd.f32 %v359_v48, %v334_v49 }
 0x27a   :  { %v473_v51 = vpop.f32.mrf.mxu0 }
 0x27b   :  { %339 = vst.msk [vmem:[#allocation8] sm:$0xff] %vm338_vm4, %v335_v50 }
 0x27c   :  { %551 = shalt.err (!%p548_p5)
}
 0x27d   :  { %349 = dma.vmem_to_hbm [thread:$0]  %s347_s3, 128, %s776_s7, [#allocation4]  }
 0x27e   :  { %564 = dma.done.wait [#allocation4], 128  }
 0x27f   :  { %565 = vsyncadd [#allocation4], 4294967168 }
 0x280   :  { %353 = vsyncpa [#allocation3], 1 }
 0x281   :  { %354 = vsyncpa [#allocation6], 1 }
 0x282   :  { %355 = vsyncpa [#allocation4], 1 }

</bundles_post_ra>
